<compile_context>
chip_gen: v7x
topology: tpu7x:2x2x1
jax: 0.10.0
libtpu: 0.0.40
codegen_flags: <defaults>
</compile_context>

<pallas_src>
import jax
import jax.numpy as jnp
from jax.experimental import pallas as pl
from jax.experimental.pallas import tpu as pltpu

LN_EPS = 1e-5
LANE = 128
ROW_ALIGN = 16          # sublane tile for bf16 row blocks (also satisfies f32's 8)


def _round_up(x, m):
    return (x + m - 1) // m * m


def _make_grn_kernel(hidden_size, o_pad, output_size):
    inv_o = 1.0 / float(output_size)

    def kernel(x_ref, c_ref, w1x_ref, w1c_ref, w2g_ref, ws_ref, vec_ref, o_ref):
        x = x_ref[...]                        # (bN, I)  bf16
        c = c_ref[...]                        # (bN, C)  bf16

        b1    = vec_ref[0:1, :hidden_size]    # (1, H)    f32
        b2    = vec_ref[1:2, :o_pad]          # (1, O_pad)
        bg    = vec_ref[2:3, :o_pad]
        bs    = vec_ref[3:4, :o_pad]
        gamma = vec_ref[4:5, :o_pad]
        beta  = vec_ref[5:6, :o_pad]

        # hidden = relu(x @ W1x + ctx @ W1c + b1), f32 accumulation on the MXU.
        h = (jnp.dot(x, w1x_ref[...], preferred_element_type=jnp.float32)
             + jnp.dot(c, w1c_ref[...], preferred_element_type=jnp.float32)
             + b1)
        h = jnp.maximum(h, 0.0)
        # dropout: identity (eval mode)
        h_bf = h.astype(jnp.bfloat16)

        # Fused output|gate matmul: one MXU pass for both branches.
        og = jnp.dot(h_bf, w2g_ref[...], preferred_element_type=jnp.float32)
        out = og[:, :o_pad] + b2
        gate = jax.nn.sigmoid(og[:, o_pad:] + bg)

        # Skip projection reuses the already-resident x tile.
        resid = jnp.dot(x, ws_ref[...], preferred_element_type=jnp.float32) + bs

        z = out * gate + resid                # padded lanes are exactly zero

        # LayerNorm over the true output_size lanes.  Padded z lanes are zero,
        # so plain sums over the padded axis are exact; divide by output_size.
        mean = jnp.sum(z, axis=-1, keepdims=True) * inv_o
        ex2 = jnp.sum(z * z, axis=-1, keepdims=True) * inv_o
        var = ex2 - mean * mean
        inv = jax.lax.rsqrt(var + LN_EPS)
        o_ref[...] = (z - mean) * inv * gamma + beta   # lane-dense (block_n, 128)

    return kernel


def prepare_grn_params(params):
    """Fuse / pad / cast the logical GRN parameters once for the kernel."""
    w1x, w1c = params["w1x"], params["w1c"]
    w2, wg, ws = params["w2"], params["wg"], params["ws"]
    hidden_size = w1x.shape[1]
    output_size = w2.shape[1]
    o_pad = _round_up(output_size, LANE)
    vw = max(o_pad, _round_up(hidden_size, LANE))

    def pad_cols(w, width):
        return jnp.pad(w, ((0, 0), (0, width - w.shape[1])))

    w2g = jnp.concatenate([pad_cols(w2, o_pad), pad_cols(wg, o_pad)], axis=1)
    ws_p = pad_cols(ws, o_pad)

    def row(v, width):
        v = v.reshape(-1).astype(jnp.float32)
        return jnp.pad(v, (0, width - v.size))

    vec = jnp.stack(
        [row(params["b1"], vw), row(params["b2"], vw), row(params["bg"], vw),
         row(params["bs"], vw), row(params["gamma"], vw), row(params["beta"], vw),
         jnp.zeros((vw,), jnp.float32), jnp.zeros((vw,), jnp.float32)],
        axis=0)                                      # (8, vw) f32, one DMA per step

    return dict(
        w1x=w1x.astype(jnp.bfloat16),
        w1c=w1c.astype(jnp.bfloat16),
        w2g=w2g.astype(jnp.bfloat16),
        ws=ws_p.astype(jnp.bfloat16),
        vec=vec,
        hidden_size=hidden_size,
        output_size=output_size,
        o_pad=o_pad,
        input_size=ws.shape[0],
        context_size=w1c.shape[0],
    )


def grn_forward(x, context, params, *, block_n_max=1024, vmem_limit_bytes=32 << 20):
    """x: (..., input_size); context: (..., context_size) or None."""
    prep = prepare_grn_params(params)
    input_size = prep["input_size"]
    hidden_size = prep["hidden_size"]
    output_size = prep["output_size"]
    context_size = prep["context_size"]
    o_pad = prep["o_pad"]

    lead = x.shape[:-1]
    x2 = x.reshape(-1, x.shape[-1]).astype(jnp.bfloat16)
    if context is None:
        # Zero context + (already-initialized) W1c contributes nothing: same math.
        c2 = jnp.zeros((x2.shape[0], context_size), jnp.bfloat16)
    else:
        c2 = context.reshape(-1, context.shape[-1]).astype(jnp.bfloat16)

    n_rows = x2.shape[0]
    # block_n: biggest row tile up to block_n_max; the per-block VMEM footprint at
    # 1024 rows is ~2 MiB (double-buffered), comfortably inside the 32 MiB scoped
    # limit on v5e/v6e and v7x's 64 MiB physical VMEM.
    block_n = min(block_n_max, _round_up(n_rows, ROW_ALIGN))
    block_n = max(ROW_ALIGN, (block_n // ROW_ALIGN) * ROW_ALIGN)
    n_pad = _round_up(n_rows, block_n)
    if n_pad != n_rows:                       # ragged tail: pad rows, slice off later
        x2 = jnp.pad(x2, ((0, n_pad - n_rows), (0, 0)))
        c2 = jnp.pad(c2, ((0, n_pad - n_rows), (0, 0)))

    grid = (n_pad // block_n,)
    vw = prep["vec"].shape[1]
    kernel = _make_grn_kernel(hidden_size, o_pad, output_size)

    out = pl.pallas_call(
        kernel,
        out_shape=jax.ShapeDtypeStruct((n_pad, o_pad), jnp.float32),
        grid=grid,
        in_specs=[
            pl.BlockSpec((block_n, input_size), lambda i: (i, 0)),      # x rows
            pl.BlockSpec((block_n, context_size), lambda i: (i, 0)),    # ctx rows
            pl.BlockSpec((input_size, hidden_size), lambda i: (0, 0)),  # W1x
            pl.BlockSpec((context_size, hidden_size), lambda i: (0, 0)),# W1c
            pl.BlockSpec((hidden_size, 2 * o_pad), lambda i: (0, 0)),   # W2|Wg fused
            pl.BlockSpec((input_size, o_pad), lambda i: (0, 0)),        # Ws
            pl.BlockSpec((8, vw), lambda i: (0, 0)),                    # bias pack
        ],
        out_specs=pl.BlockSpec((block_n, o_pad), lambda i: (i, 0)),
        compiler_params=pltpu.CompilerParams(
            dimension_semantics=("parallel",),   # shard row grid across TCs (v7x)
            vmem_limit_bytes=vmem_limit_bytes,
        ),
    )(x2, c2, prep["w1x"], prep["w1c"], prep["w2g"], prep["ws"], prep["vec"])

    return out[:n_rows, :output_size].reshape(*lead, output_size)


def init_params(key, input_size, hidden_size, output_size, context_size):
    """Deterministic synthetic parameters (nn.Linear-style init).

    Logical layout: weights (in, out), biases (out,).  W1 is pre-split into its
    x part and context part so the kernel never needs the concatenated input.
    """
    in1 = input_size + (context_size or 0)
    ks = jax.random.split(key, 8)

    def lin(kw, kb, fin, fout):
        bound = 1.0 / jnp.sqrt(fin)
        w = jax.random.uniform(kw, (fin, fout), jnp.float32, -bound, bound)
        b = jax.random.uniform(kb, (fout,), jnp.float32, -bound, bound)
        return w, b

    w1, b1 = lin(ks[0], ks[1], in1, hidden_size)
    w2, b2 = lin(ks[2], ks[3], hidden_size, output_size)
    wg, bg = lin(ks[4], ks[5], hidden_size, output_size)
    ws, bs = lin(ks[6], ks[7], input_size, output_size)
    return dict(
        w1x=w1[:input_size], w1c=w1[input_size:], b1=b1,
        w2=w2, b2=b2, wg=wg, bg=bg, ws=ws, bs=bs,
        gamma=jnp.ones((output_size,), jnp.float32),
        beta=jnp.zeros((output_size,), jnp.float32),
    )


def grn_reference(x, context, params):
    """Pure-JAX reference of the PyTorch forward (eval mode), using the same bf16
    operand quantization / f32 accumulation as the kernel."""
    bf = jnp.bfloat16
    xb = x.astype(bf)
    h = jnp.dot(xb, params["w1x"].astype(bf), preferred_element_type=jnp.float32)
    if context is not None:
        h = h + jnp.dot(context.astype(bf), params["w1c"].astype(bf),
                        preferred_element_type=jnp.float32)
    h = jax.nn.relu(h + params["b1"])
    hb = h.astype(bf)
    out = jnp.dot(hb, params["w2"].astype(bf),
                  preferred_element_type=jnp.float32) + params["b2"]
    gate = jax.nn.sigmoid(jnp.dot(hb, params["wg"].astype(bf),
                                  preferred_element_type=jnp.float32) + params["bg"])
    resid = jnp.dot(xb, params["ws"].astype(bf),
                    preferred_element_type=jnp.float32) + params["bs"]
    z = out * gate + resid
    mean = jnp.mean(z, axis=-1, keepdims=True)
    var = jnp.mean((z - mean) ** 2, axis=-1, keepdims=True)
    return (z - mean) * jax.lax.rsqrt(var + LN_EPS) * params["gamma"] + params["beta"]


if __name__ == "__main__":
    key = jax.random.PRNGKey(0)
    k_p, k_x, k_c = jax.random.split(key, 3)

    batch, seq = 2, 8
    input_size, hidden_size, output_size, context_size = 8, 32, 16, 4

    params = init_params(k_p, input_size, hidden_size, output_size, context_size)
    x = jax.random.normal(k_x, (batch, seq, input_size), jnp.float32)
    context = jax.random.normal(k_c, (batch, seq, context_size), jnp.float32)

    y = grn_forward(x, context, params)
    jax.block_until_ready(y)

    y_ref = grn_reference(x, context, params)
    assert y.shape == (batch, seq, output_size)
    assert jnp.allclose(y, y_ref, atol=2e-3, rtol=2e-3), (
        "mismatch vs reference: max abs err = "
        f"{jnp.max(jnp.abs(y - y_ref))}")

    print("KERNEL_OK")
</pallas_src>

<mosaic_0001>
module attributes {stable_mosaic.version = 11 : i64} {
  func.func @kernel(%arg0: i32, %arg1: memref<16x8xbf16, #tpu.memory_space<vmem>>, %arg2: memref<16x4xbf16, #tpu.memory_space<vmem>>, %arg3: memref<8x32xbf16, #tpu.memory_space<vmem>>, %arg4: memref<4x32xbf16, #tpu.memory_space<vmem>>, %arg5: memref<32x256xbf16, #tpu.memory_space<vmem>>, %arg6: memref<8x128xbf16, #tpu.memory_space<vmem>>, %arg7: memref<8x128xf32, #tpu.memory_space<vmem>>, %arg8: memref<16x128xf32, #tpu.memory_space<vmem>>) attributes {dimension_semantics = [#tpu.dimension_semantics<parallel>], iteration_bounds = array<i64: 1>, scalar_prefetch = 0 : i64, scratch_operands = 0 : i64, tpu.core_type = #tpu.core_type<tc>, window_params = [{transform_indices = @transform_0, window_bounds = array<i64: 16, 8>}, {transform_indices = @transform_1, window_bounds = array<i64: 16, 4>}, {pipeline_mode = #tpu.pipeline_mode<synchronous>, transform_indices = @transform_2, window_bounds = array<i64: 8, 32>}, {pipeline_mode = #tpu.pipeline_mode<synchronous>, transform_indices = @transform_3, window_bounds = array<i64: 4, 32>}, {pipeline_mode = #tpu.pipeline_mode<synchronous>, transform_indices = @transform_4, window_bounds = array<i64: 32, 256>}, {pipeline_mode = #tpu.pipeline_mode<synchronous>, transform_indices = @transform_5, window_bounds = array<i64: 8, 128>}, {pipeline_mode = #tpu.pipeline_mode<synchronous>, transform_indices = @transform_6, window_bounds = array<i64: 8, 128>}, {transform_indices = @transform_7, window_bounds = array<i64: 16, 128>}]} {
    %c0 = arith.constant 0 : index
    %c0_0 = arith.constant 0 : index
    %0 = vector.load %arg1[%c0, %c0_0] : memref<16x8xbf16, #tpu.memory_space<vmem>>, vector<16x8xbf16>
    %c0_1 = arith.constant 0 : index
    %c0_2 = arith.constant 0 : index
    %1 = vector.load %arg2[%c0_1, %c0_2] : memref<16x4xbf16, #tpu.memory_space<vmem>>, vector<16x4xbf16>
    %c0_3 = arith.constant 0 : index
    %c0_4 = arith.constant 0 : index
    %2 = vector.load %arg7[%c0_3, %c0_4] : memref<8x128xf32, #tpu.memory_space<vmem>>, vector<1x32xf32>
    %c1 = arith.constant 1 : index
    %c0_5 = arith.constant 0 : index
    %3 = vector.load %arg7[%c1, %c0_5] : memref<8x128xf32, #tpu.memory_space<vmem>>, vector<1x128xf32>
    %c2 = arith.constant 2 : index
    %c0_6 = arith.constant 0 : index
    %4 = vector.load %arg7[%c2, %c0_6] : memref<8x128xf32, #tpu.memory_space<vmem>>, vector<1x128xf32>
    %c3 = arith.constant 3 : index
    %c0_7 = arith.constant 0 : index
    %5 = vector.load %arg7[%c3, %c0_7] : memref<8x128xf32, #tpu.memory_space<vmem>>, vector<1x128xf32>
    %c4 = arith.constant 4 : index
    %c0_8 = arith.constant 0 : index
    %6 = vector.load %arg7[%c4, %c0_8] : memref<8x128xf32, #tpu.memory_space<vmem>>, vector<1x128xf32>
    %c5 = arith.constant 5 : index
    %c0_9 = arith.constant 0 : index
    %7 = vector.load %arg7[%c5, %c0_9] : memref<8x128xf32, #tpu.memory_space<vmem>>, vector<1x128xf32>
    %c0_10 = arith.constant 0 : index
    %c0_11 = arith.constant 0 : index
    %8 = vector.load %arg3[%c0_10, %c0_11] : memref<8x32xbf16, #tpu.memory_space<vmem>>, vector<8x32xbf16>
    %cst = arith.constant dense<0.000000e+00> : vector<16x32xf32>
    %9 = tpu.matmul %0, %8, %cst {dimension_numbers = #tpu.dot_dimension_numbers<[1], [0], [0], [1], [0, 0, 1, 1], [], []>} : vector<16x8xbf16>, vector<8x32xbf16>, vector<16x32xf32> -> vector<16x32xf32>
    %c0_12 = arith.constant 0 : index
    %c0_13 = arith.constant 0 : index
    %10 = vector.load %arg4[%c0_12, %c0_13] : memref<4x32xbf16, #tpu.memory_space<vmem>>, vector<4x32xbf16>
    %cst_14 = arith.constant dense<0.000000e+00> : vector<16x32xf32>
    %11 = tpu.matmul %1, %10, %cst_14 {dimension_numbers = #tpu.dot_dimension_numbers<[1], [0], [0], [1], [0, 0, 1, 1], [], []>} : vector<16x4xbf16>, vector<4x32xbf16>, vector<16x32xf32> -> vector<16x32xf32>
    %12 = arith.addf %9, %11 : vector<16x32xf32>
    %13 = vector.broadcast %2 : vector<1x32xf32> to vector<16x32xf32>
    %14 = arith.addf %12, %13 : vector<16x32xf32>
    %cst_15 = arith.constant 0.000000e+00 : f32
    %15 = vector.broadcast %cst_15 : f32 to vector<16x32xf32>
    %16 = arith.maximumf %14, %15 : vector<16x32xf32>
    %17 = arith.truncf %16 : vector<16x32xf32> to vector<16x32xbf16>
    %c0_16 = arith.constant 0 : index
    %c0_17 = arith.constant 0 : index
    %18 = vector.load %arg5[%c0_16, %c0_17] : memref<32x256xbf16, #tpu.memory_space<vmem>>, vector<32x256xbf16>
    %cst_18 = arith.constant dense<0.000000e+00> : vector<16x256xf32>
    %19 = tpu.matmul %17, %18, %cst_18 {dimension_numbers = #tpu.dot_dimension_numbers<[1], [0], [0], [1], [0, 0, 1, 1], [], []>} : vector<16x32xbf16>, vector<32x256xbf16>, vector<16x256xf32> -> vector<16x256xf32>
    %20 = vector.extract_strided_slice %19 {offsets = [0, 0], sizes = [16, 128], strides = [1, 1]} : vector<16x256xf32> to vector<16x128xf32>
    %21 = vector.broadcast %3 : vector<1x128xf32> to vector<16x128xf32>
    %22 = arith.addf %20, %21 : vector<16x128xf32>
    %23 = vector.extract_strided_slice %19 {offsets = [0, 128], sizes = [16, 128], strides = [1, 1]} : vector<16x256xf32> to vector<16x128xf32>
    %24 = vector.broadcast %4 : vector<1x128xf32> to vector<16x128xf32>
    %25 = arith.addf %23, %24 : vector<16x128xf32>
    %26 = arith.negf %25 : vector<16x128xf32>
    %27 = math.exp %26 : vector<16x128xf32>
    %cst_19 = arith.constant 1.000000e+00 : f32
    %28 = vector.broadcast %cst_19 : f32 to vector<16x128xf32>
    %29 = arith.addf %28, %27 : vector<16x128xf32>
    %30 = arith.divf %28, %29 : vector<16x128xf32>
    %c0_20 = arith.constant 0 : index
    %c0_21 = arith.constant 0 : index
    %31 = vector.load %arg6[%c0_20, %c0_21] : memref<8x128xbf16, #tpu.memory_space<vmem>>, vector<8x128xbf16>
    %cst_22 = arith.constant dense<0.000000e+00> : vector<16x128xf32>
    %32 = tpu.matmul %0, %31, %cst_22 {dimension_numbers = #tpu.dot_dimension_numbers<[1], [0], [0], [1], [0, 0, 1, 1], [], []>} : vector<16x8xbf16>, vector<8x128xbf16>, vector<16x128xf32> -> vector<16x128xf32>
    %33 = vector.broadcast %5 : vector<1x128xf32> to vector<16x128xf32>
    %34 = arith.addf %32, %33 : vector<16x128xf32>
    %35 = arith.mulf %22, %30 : vector<16x128xf32>
    %36 = arith.addf %35, %34 : vector<16x128xf32>
    %cst_23 = arith.constant dense<0.000000e+00> : vector<16xf32>
    %37 = vector.multi_reduction <add>, %36, %cst_23 [1] : vector<16x128xf32> to vector<16xf32>
    %38 = vector.shape_cast %37 : vector<16xf32> to vector<16x1xf32>
    %cst_24 = arith.constant 6.250000e-02 : f32
    %39 = vector.broadcast %cst_24 : f32 to vector<16x1xf32>
    %40 = arith.mulf %38, %39 : vector<16x1xf32>
    %41 = arith.mulf %36, %36 : vector<16x128xf32>
    %cst_25 = arith.constant dense<0.000000e+00> : vector<16xf32>
    %42 = vector.multi_reduction <add>, %41, %cst_25 [1] : vector<16x128xf32> to vector<16xf32>
    %43 = vector.shape_cast %42 : vector<16xf32> to vector<16x1xf32>
    %cst_26 = arith.constant 6.250000e-02 : f32
    %44 = vector.broadcast %cst_26 : f32 to vector<16x1xf32>
    %45 = arith.mulf %43, %44 : vector<16x1xf32>
    %46 = arith.mulf %40, %40 : vector<16x1xf32>
    %47 = arith.subf %45, %46 : vector<16x1xf32>
    %cst_27 = arith.constant 9.99999974E-6 : f32
    %48 = vector.broadcast %cst_27 : f32 to vector<16x1xf32>
    %49 = arith.addf %47, %48 : vector<16x1xf32>
    %50 = math.rsqrt %49 : vector<16x1xf32>
    %51 = vector.broadcast %40 : vector<16x1xf32> to vector<16x128xf32>
    %52 = arith.subf %36, %51 : vector<16x128xf32>
    %53 = vector.broadcast %50 : vector<16x1xf32> to vector<16x128xf32>
    %54 = arith.mulf %52, %53 : vector<16x128xf32>
    %55 = vector.broadcast %6 : vector<1x128xf32> to vector<16x128xf32>
    %56 = arith.mulf %54, %55 : vector<16x128xf32>
    %57 = vector.broadcast %7 : vector<1x128xf32> to vector<16x128xf32>
    %58 = arith.addf %56, %57 : vector<16x128xf32>
    %c0_28 = arith.constant 0 : index
    %c0_29 = arith.constant 0 : index
    %59 = vector.load %arg8[%c0_28, %c0_29] : memref<16x128xf32, #tpu.memory_space<vmem>>, vector<16x128xf32>
    tpu.vector_store %arg8[%c0_28, %c0_29], %58 {strides = array<i32>} : memref<16x128xf32, #tpu.memory_space<vmem>>, vector<16x128xf32>,
    return
  }
  func.func @transform_0(%arg0: i32) -> (i32, i32) {
    %c0_i32 = arith.constant 0 : i32
    %c0_i32_0 = arith.constant 0 : i32
    return %arg0, %c0_i32 : i32, i32
  }
  func.func @transform_1(%arg0: i32) -> (i32, i32) {
    %c0_i32 = arith.constant 0 : i32
    %c0_i32_0 = arith.constant 0 : i32
    return %arg0, %c0_i32 : i32, i32
  }
  func.func @transform_2(%arg0: i32) -> (i32, i32) {
    %c0_i32 = arith.constant 0 : i32
    %c0_i32_0 = arith.constant 0 : i32
    %c0_i32_1 = arith.constant 0 : i32
    return %c0_i32, %c0_i32_0 : i32, i32
  }
  func.func @transform_3(%arg0: i32) -> (i32, i32) {
    %c0_i32 = arith.constant 0 : i32
    %c0_i32_0 = arith.constant 0 : i32
    %c0_i32_1 = arith.constant 0 : i32
    return %c0_i32, %c0_i32_0 : i32, i32
  }
  func.func @transform_4(%arg0: i32) -> (i32, i32) {
    %c0_i32 = arith.constant 0 : i32
    %c0_i32_0 = arith.constant 0 : i32
    %c0_i32_1 = arith.constant 0 : i32
    return %c0_i32, %c0_i32_0 : i32, i32
  }
  func.func @transform_5(%arg0: i32) -> (i32, i32) {
    %c0_i32 = arith.constant 0 : i32
    %c0_i32_0 = arith.constant 0 : i32
    %c0_i32_1 = arith.constant 0 : i32
    return %c0_i32, %c0_i32_0 : i32, i32
  }
  func.func @transform_6(%arg0: i32) -> (i32, i32) {
    %c0_i32 = arith.constant 0 : i32
    %c0_i32_0 = arith.constant 0 : i32
    %c0_i32_1 = arith.constant 0 : i32
    return %c0_i32, %c0_i32_0 : i32, i32
  }
  func.func @transform_7(%arg0: i32) -> (i32, i32) {
    %c0_i32 = arith.constant 0 : i32
    %c0_i32_0 = arith.constant 0 : i32
    return %arg0, %c0_i32 : i32, i32
  }
}

</mosaic_0001>

<bundles_post_ra>
// kernel: tpu_custom_call.1
= control target key start
LH: loop header
LB: loop body
LE: loop exit
PB: predicated region body
PF: predicated region fallthrough
CT: control target
= control target key end

     0   :  { %12 = vsyncpa [#allocation3], 0  ;;  %s699_s0 = inlined_call_operand.vmem [shape: bf16[16,8], index: 0, kind: input, shape index: {}]   ;;  %s700_s1 = inlined_call_operand.vmem [shape: bf16[16,4], index: 1, kind: input, shape index: {}]   ;;  %s701_s2 = inlined_call_operand.hbm [shape: bf16[8,32], index: 2, kind: input, shape index: {}]   ;;  %s702_s3 = inlined_call_operand.hbm [shape: bf16[4,32], index: 3, kind: input, shape index: {}]   ;;  %s703_s4 = inlined_call_operand.vmem [shape: bf16[32,256], index: 4, kind: input, shape index: {}]   ;;  %s704_s5 = inlined_call_operand.hbm [shape: bf16[8,128], index: 5, kind: input, shape index: {}]   ;;  %s705_s6 = inlined_call_operand.vmem [shape: f32[8,128], index: 6, kind: input, shape index: {}]   ;;  %s706_s7 = inlined_call_operand.hbm [shape: f32[16,128], index: 7, kind: output, shape index: {}]  }
   0x1   :  { %13 = vsyncpa [#allocation6], 0 }
   0x2   :  { %14 = vsyncpa [#allocation4], 0  ;;  %s563_s24 = smov [#allocation5]   ;;  %s564_s26 = smov [#allocation2]  }
   0x3   :  { %s35_s25 = sshll.u32 %s563_s24, 4  ;;  %s25_s27 = sshll.u32 %s564_s26, 4  ;;  %s36_s25 = int_to_ptr.vmem [resolvable:$true] %s35_s25  ;;  %s26_s27 = int_to_ptr.vmem [resolvable:$true] %s25_s27 }
   0x4   :  { %s469_s30 = scalar_lea.hbm %s702_s3, 32 }
   0x5   :  { %p470_p0 = scmp.ne.s32.totalorder %s702_s3, %s469_s30  ;;  %p473_p1 = scmp.lt.u32.totalorder %s469_s30, %s702_s3 }
   0x7   :  { %p475_p2 = pnand %p473_p1, %p470_p0 }
   0x9   :  { %478 = shalt.err (!%p475_p2)
}
   0xa   :  { %s479_s12 = scalar_lea.vmem %s36_s25, 32  ;;  %p484_p4 = scmp.lt.s32.totalorder %s36_s25, %s36_s25 }
   0xb   :  { %p480_p3 = scmp.ne.s32.totalorder %s36_s25, %s479_s12  ;;  %p485_p5 = scmp.lt.s32.totalorder %s479_s12, %s479_s12 }
   0xd   :  { %p486_p6 = por %p485_p5, %p484_p4 }
   0xf   :  { %p487_p7 = pnand %p486_p6, %p480_p3 }
  0x11   :  { %490 = shalt.err (!%p487_p7)
}
  0x12   :  { %38 = dma.hbm_to_vmem [thread:$0]  %s702_s3, 32, %s36_s25, [#allocation6]  }
  0x13   :  { %s491_s17 = scalar_lea.hbm %s701_s2, 64 }
  0x14   :  { %p492_p8 = scmp.ne.s32.totalorder %s701_s2, %s491_s17  ;;  %p495_p9 = scmp.lt.u32.totalorder %s491_s17, %s701_s2 }
  0x16   :  { %p497_p10 = pnand %p495_p9, %p492_p8 }
  0x18   :  { %500 = shalt.err (!%p497_p10)
}
  0x19   :  { %s501_s22 = scalar_lea.vmem %s26_s27, 64  ;;  %p506_p12 = scmp.lt.s32.totalorder %s26_s27, %s26_s27 }
  0x1a   :  { %p502_p11 = scmp.ne.s32.totalorder %s26_s27, %s501_s22  ;;  %p507_p13 = scmp.lt.s32.totalorder %s501_s22, %s501_s22 }
  0x1c   :  { %p508_p0 = por %p507_p13, %p506_p12 }
  0x1e   :  { %p509_p1 = pnand %p508_p0, %p502_p11 }
  0x20   :  { %512 = shalt.err (!%p509_p1)
}
  0x21   :  { %28 = dma.hbm_to_vmem [thread:$0]  %s701_s2, 64, %s26_s27, [#allocation3]  }
  0x22   :  { %s565_s24 = smov [#allocation7]   ;;  %s513_s29 = scalar_lea.hbm %s704_s5, 64 }
  0x23   :  { %s47_s25 = sshll.u32 %s565_s24, 4  ;;  %p514_p2 = scmp.ne.s32.totalorder %s704_s5, %s513_s29  ;;  %s48_s25 = int_to_ptr.vmem [resolvable:$true] %s47_s25 }
  0x24   :  { %p517_p3 = scmp.lt.u32.totalorder %s513_s29, %s704_s5 }
  0x26   :  { %p519_p4 = pnand %p517_p3, %p514_p2 }
  0x28   :  { %522 = shalt.err (!%p519_p4)
}
  0x29   :  { %s523_s11 = scalar_lea.vmem %s48_s25, 64  ;;  %p528_p6 = scmp.lt.s32.totalorder %s48_s25, %s48_s25 }
  0x2a   :  { %p524_p5 = scmp.ne.s32.totalorder %s48_s25, %s523_s11  ;;  %p529_p7 = scmp.lt.s32.totalorder %s523_s11, %s523_s11 }
  0x2c   :  { %p530_p8 = por %p529_p7, %p528_p6 }
  0x2e   :  { %p531_p9 = pnand %p530_p8, %p524_p5 }
  0x30   :  { %534 = shalt.err (!%p531_p9)
}
  0x31   :  { %50 = dma.hbm_to_vmem [thread:$0]  %s704_s5, 64, %s48_s25, [#allocation6]  }
  0x32   :  { %557 = dma.done.wait [#allocation3], 64  }
  0x33   :  { %558 = vsyncadd [#allocation3], 4294967232 }
  0x34   :  { %559 = dma.done.wait [#allocation6], 96  }
  0x35   :  { %560 = vsyncadd [#allocation6], 4294967200  ;;  %v566_v0 = vmov 0.0   ;;  %vm567_vm0 = vmmov 0   ;;  %vm84_vm1 = vcmask 1041408   ;;  %vm138_vm2 = vcmask 1043456  }
  0x36   :  { %422 = vmatprep.subr.bf16.mxu0 %v566_v0  ;;  %428 = vmatprep.subr.bf16.mxu1 %v566_v0  ;;  %vm80_vm3 = vcmask 31744   ;;  %v74_v1 = vld [vmem:[#allocation5] sm:$0x3]  ;;  %v73_v2 = vld [vmem:[#allocation2] sm:$0xf]  ;;  %v449_v6 = vld [vmem:[%s700_s1] sm:$0xff]  }
  0x37   :  { %424 = vmatprep.mubr.msk.bf16.mxu0 %vm567_vm0, %v566_v0  ;;  %430 = vmatprep.mubr.msk.bf16.mxu1 %vm567_vm0, %v566_v0  ;;  %v287_v3 = vld [vmem:[#allocation7] sm:$0xf]  ;;  %v86_v4 = vsel %vm84_vm1, %v74_v1, 0  ;;  %v140_v5 = vsel %vm138_vm2, %v73_v2, 0  ;;  %vm134_vm4 = vcmask 64512   ;;  %v450_v8 = vld [vmem:[%s699_s0] sm:$0xff]  }
  0x38   :  { %423 = vmatpush3.bf16.msra.mxu0 %v86_v4  ;;  %429 = vmatpush3.bf16.msra.mxu1 %v140_v5  ;;  %v293_v7 = vsel %vm138_vm2, %v287_v3, 0  ;;  %v453_v9 = vld [vmem:[%s703_s4 + $0x4] ss:$8 sps:$4 sm:$0xff]   ;;  %v451_v10 = vld [vmem:[%s703_s4] ss:$8 sps:$4 sm:$0xff]   ;;  %v568_v13 = vmov 0  }
  0x39   :  { %434 = vmatprep.subr.bf16.mxu1 %v566_v0  ;;  %220 = vmatprep.subr.bf16.mxu0 %v453_v9  ;;  %v456_v11 = vld [vmem:[%s703_s4 + $0x14] ss:$8 sps:$4 sm:$0xff]   ;;  %v454_v12 = vld [vmem:[%s703_s4 + $0x10] ss:$8 sps:$4 sm:$0xff]   ;;  %v402_v15 = vld [vmem:[%s705_s6] ss:$0 sm:$0xff] }
  0x3a   :  { %vm216_vm5 = vcmask 261120   ;;  %v409_v34 = vld [vmem:[%s705_s6 + $0x2] ss:$0 sm:$0xff]  ;;  %v408_v47 = vld [vmem:[%s705_s6 + $0x1] ss:$0 sm:$0xff]  ;;  %s569_s9 = smov [#allocation8]  }
  0x3b   :  { %425 = vmatmul.mubr.msk.bf16.vlgmr.msra.gmra.mrb[0].mxu0 %vm80_vm3, %v449_v6  ;;  %431 = vmatmul.mubr.msk.bf16.vlgmr.msra.gmra.mrb[0].mxu1 %vm134_vm4, %v450_v8  ;;  %v412_v48 = vld [vmem:[%s705_s6 + $0x3] ss:$0 sm:$0xff]  ;;  %s385_s10 = sshll.u32 %s569_s9, 4  ;;  %s386_s10 = int_to_ptr.vmem [resolvable:$true] %s385_s10 }
  0x3c   :  { %435 = vmatpush3.bf16.msra.mxu1 %v293_v7  ;;  %436 = vmatprep.mubr.msk.bf16.mxu1 %vm567_vm0, %v566_v0  ;;  %s535_s11 = scalar_lea.vmem %s386_s10, 256  ;;  %p540_p11 = scmp.lt.s32.totalorder %s386_s10, %s386_s10 }
  0x3d   :  { %221 = vmatpush1.bf16.msra.mxu0 %v451_v10  ;;  %252 = vmatprep.mubr.bf16.mxu0 %v568_v13  ;;  %v414_v13 = vld [vmem:[%s705_s6 + $0x4] ss:$0 sm:$0xff]  ;;  %p536_p10 = scmp.ne.s32.totalorder %s386_s10, %s535_s11  ;;  %p541_p12 = scmp.lt.s32.totalorder %s535_s11, %s535_s11 }
  0x3e   :  { %222 = vmatprep.subr.bf16.mxu0 %v456_v11 }
  0x3f   :  { %p542_p13 = por %p541_p12, %p540_p11 }
  0x41   :  { %223 = vmatpush1.bf16.msra.mxu0 %v454_v12  ;;  %p543_p0 = pnand %p542_p13, %p536_p10 }
  0x43   :  { %437 = vmatmul.mubr.msk.bf16.vlgmr.msra.gmra.mrb[4].mxu1 %vm134_vm4, %v450_v8 }
 0x10e   :  { %v122_v14 = vpop.f32.mrb[0].mxu0  ;;  %v176_v16 = vpop.f32.mrb[0].mxu1 }
 0x10f   :  { %v177_v17 = vadd.f32 %v176_v16, %v122_v14  ;;  %v426_v18 = vpop.f32.mrb[1].mxu0  ;;  %v432_v19 = vpop.f32.mrb[1].mxu1 }
 0x110   :  { %v125_v20 = vpop.f32.mrb[2].mxu0  ;;  %v179_v21 = vpop.f32.mrb[2].mxu1 }
 0x111   :  { %v187_v22 = vadd.f32 %v402_v15, %v177_v17  ;;  %v180_v23 = vadd.f32 %v179_v21, %v125_v20  ;;  %v427_v24 = vpop.f32.mrb[3].mxu0  ;;  %v433_v25 = vpop.f32.mrb[3].mxu1 }
 0x113   :  { %v188_v26 = vadd.f32 %v402_v15, %v180_v23  ;;  %v189_v27 = vmax.f32 %v187_v22, 0.0  ;;  %v415_v15 = vld [vmem:[%s705_s6 + $0x5] ss:$0 sm:$0xff] }
 0x115   :  { %v190_v28 = vmax.f32 %v188_v26, 0.0 }
 0x116   :  { %v329_v30 = vpop.f32.mrb[4].mxu1 }
 0x117   :  { %v191_v29 = vpack.c.bf16 %v190_v28, %v189_v27  ;;  %v438_v31 = vpop.f32.mrb[5].mxu1  ;;  %v330_v50 = vadd.f32 %v412_v48, %v329_v30 }
 0x118   :  { %v332_v32 = vpop.f32.mrb[6].mxu1 }
 0x119   :  { %407 = vmatmul.mubr.msk.bf16.vlgmr.msra.gmra.mrb[4].mxu0 %vm216_vm5, %v191_v29  ;;  %v439_v33 = vpop.f32.mrb[7].mxu1  ;;  %v333_v56 = vadd.f32 %v412_v48, %v332_v32 }
 0x1ec   :  { %v254_v35 = vpop.f32.mrb[4].mxu0 }
 0x1ed   :  { %v256_v36 = vpop.f32.mrb[5].mxu0  ;;  %v267_v49 = vadd.f32 %v408_v47, %v254_v35 }
 0x1ee   :  { %v273_v37 = vadd.f32 %v409_v34, %v256_v36  ;;  %v258_v38 = vpop.f32.mrb[6].mxu0 }
 0x1ef   :  { %v260_v39 = vpop.f32.mrb[7].mxu0  ;;  %v268_v52 = vadd.f32 %v408_v47, %v258_v38 }
 0x1f0   :  { %v410_v40 = vmul.f32 -1.442695, %v273_v37  ;;  %v274_v41 = vadd.f32 %v409_v34, %v260_v39 }
 0x1f2   :  { %457 = vpow2.f32 %v410_v40  ;;  %v411_v42 = vmul.f32 -1.442695, %v274_v41 }
 0x1f4   :  { %459 = vpow2.f32 %v411_v42 }
 0x1fc   :  { %v458_v43 = vpop.eup %457 }
 0x1fd   :  { %v281_v44 = vadd.f32 1.0, %v458_v43 }
 0x1fe   :  { %v460_v45 = vpop.eup %459 }
 0x1ff   :  { %461 = vrcp.f32 %v281_v44  ;;  %v282_v46 = vadd.f32 1.0, %v460_v45 }
 0x201   :  { %463 = vrcp.f32 %v282_v46 }
 0x209   :  { %v462_v51 = vpop.eup %461 }
 0x20a   :  { %v336_v53 = vmul.f32 %v462_v51, %v267_v49 }
 0x20b   :  { %v464_v54 = vpop.eup %463 }
 0x20c   :  { %v338_v55 = vadd.f32 %v336_v53, %v330_v50  ;;  %v337_v57 = vmul.f32 %v464_v54, %v268_v52 }
 0x20e   :  { %v339_v58 = vadd.f32 %v337_v57, %v333_v56  ;;  %340 = vadd.xlane.f32.xlu0 %v338_v55  ;;  %v346_v59 = vmul.f32 %v338_v55, %v338_v55 }
 0x210   :  { %348 = vadd.xlane.f32.xlu1 %v346_v59  ;;  %v347_v60 = vmul.f32 %v339_v58, %v339_v58 }
 0x212   :  { %342 = vadd.xlane.f32.xlu0 %v339_v58 }
 0x214   :  { %350 = vadd.xlane.f32.xlu1 %v347_v60 }
 0x29b   :  { %v341_v61 = vpop.xlane.xlu0 %340 }
 0x29c   :  { %v344_v62 = vmul.f32 0.0625, %v341_v61 }
 0x29d   :  { %v349_v63 = vpop.xlane.xlu1 %348 }
 0x29e   :  { %v354_v0 = vmul.f32 %v344_v62, %v344_v62  ;;  %v352_v1 = vmul.f32 0.0625, %v349_v63  ;;  %v362_v11 = vsub.f32 %v338_v55, %v344_v62 }
 0x29f   :  { %v343_v2 = vpop.xlane.xlu0 %342 }
 0x2a0   :  { %v356_v3 = vsub.f32 %v352_v1, %v354_v0  ;;  %v345_v4 = vmul.f32 0.0625, %v343_v2 }
 0x2a1   :  { %v351_v5 = vpop.xlane.xlu1 %350 }
 0x2a2   :  { %v358_v6 = vadd.f32 1e-05, %v356_v3  ;;  %v355_v7 = vmul.f32 %v345_v4, %v345_v4  ;;  %v353_v8 = vmul.f32 0.0625, %v351_v5  ;;  %v363_v16 = vsub.f32 %v339_v58, %v345_v4 }
 0x2a4   :  { %465 = vrsqrt.f32 %v358_v6  ;;  %v357_v9 = vsub.f32 %v353_v8, %v355_v7 }
 0x2a6   :  { %v359_v10 = vadd.f32 1e-05, %v357_v9 }
 0x2a8   :  { %467 = vrsqrt.f32 %v359_v10 }
 0x2ae   :  { %v466_v12 = vpop.eup %465 }
 0x2af   :  { %v364_v14 = vmul.f32 %v466_v12, %v362_v11 }
 0x2b1   :  { %v370_v17 = vmul.f32 %v414_v13, %v364_v14 }
 0x2b2   :  { %v468_v18 = vpop.eup %467 }
 0x2b3   :  { %v365_v19 = vmul.f32 %v468_v18, %v363_v16  ;;  %v376_v20 = vadd.f32 %v415_v15, %v370_v17 }
 0x2b5   :  { %v371_v21 = vmul.f32 %v414_v13, %v365_v19  ;;  %378 = vst [vmem:[#allocation8] sm:$0xff] %v376_v20 }
 0x2b7   :  { %v377_v22 = vadd.f32 %v415_v15, %v371_v21 }
 0x2b9   :  { %379 = vst [vmem:[#allocation8 + $0x8] sm:$0xff] %v377_v22 }
 0x2ba   :  { %546 = shalt.err (!%p543_p0)
}
 0x2bb   :  { %s547_s27 = scalar_lea.hbm %s706_s7, 256 }
 0x2bc   :  { %p548_p1 = scmp.ne.s32.totalorder %s706_s7, %s547_s27  ;;  %p551_p2 = scmp.lt.u32.totalorder %s547_s27, %s706_s7 }
 0x2be   :  { %p553_p3 = pnand %p551_p2, %p548_p1 }
 0x2c0   :  { %556 = shalt.err (!%p553_p3)
}
 0x2c1   :  { %s570_s15 = smov 128   ;;  %s571_s16 = smov 8  }
 0x2c2   :  { %391 = dma.vmem_to_hbm [thread:$0]  %s386_s10, 256, %s706_s7, [#allocation4], %s570_s15, %s570_s15, %s571_s16  }
 0x2c3   :  { %561 = dma.done.wait [#allocation4], 256  }
 0x2c4   :  { %562 = vsyncadd [#allocation4], 4294967040 }
 0x2c5   :  { %395 = vsyncpa [#allocation3], 1 }
 0x2c6   :  { %396 = vsyncpa [#allocation6], 1 }
 0x2c7   :  { %397 = vsyncpa [#allocation4], 1 }

</bundles_post_ra>
